<compile_context>
chip_gen: v7x
topology: tpu7x:2x2x1
jax: 0.10.0
libtpu: 0.0.40
codegen_flags: <defaults>
</compile_context>

<pallas_src>
import functools

import jax
import jax.numpy as jnp
from jax.experimental import pallas as pl
from jax.experimental.pallas import tpu as pltpu

Z_DIM = 2
OUT_DIM = 100
LAYER_DIMS = (Z_DIM, 10, 20, 50, OUT_DIM)  # get_decoder() architecture
NOISE_SCALER = 0.1
DEFAULT_TILE_B = 1024  # sized so 2x-buffered tiles fit v7x's 64 MiB VMEM


def _make_kernel(randomness: bool, return_sigma: bool):
    """Build the kernel body for the given static flags."""

    def kernel(*refs):
        i = 0
        x_ref = refs[i]; i += 1
        noise_ref = None
        if randomness:
            noise_ref = refs[i]; i += 1
        (w0_ref, b0_ref, w1_ref, b1_ref, w2_ref, b2_ref,
         w3m_ref, b3m_ref, w3s_ref, b3s_ref) = refs[i:i + 10]
        i += 10
        y_ref = refs[i]; i += 1
        sigma_ref = refs[i] if return_sigma else None

        x = x_ref[...].astype(jnp.float32)      # (tb, 2)
        w0 = w0_ref[...]                        # (2, 20), f32

        # Layer 0 (K=2): two VPU scaled-vector adds instead of an MXU matmul.
        h = jnp.tanh(x[:, 0:1] * w0[0:1, :] + x[:, 1:2] * w0[1:2, :]
                     + b0_ref[...])             # (tb, 20) = [mu_h0 | sg_h0]

        def dense(hh, w_ref, b_ref):
            return jnp.tanh(
                jnp.dot(hh.astype(w_ref.dtype), w_ref[...],
                        preferred_element_type=jnp.float32) + b_ref[...])

        # Layers 1-2: fused (block-diagonal) matmuls on the packed hidden state.
        h = dense(h, w1_ref, b1_ref)            # (tb, 40)
        h = dense(h, w2_ref, b2_ref)            # (tb, 100) = [mu_h2 | sg_h2]
        # Layer 3: two zero-padded (100,100) matmuls -> mu, sigma directly
        # (independent; avoids slicing a 200-lane fused output across vregs).
        mu = dense(h, w3m_ref, b3m_ref)         # (tb, 100)
        sigma = dense(h, w3s_ref, b3s_ref)      # (tb, 100)

        if return_sigma:
            sigma_ref[...] = sigma.astype(sigma_ref.dtype)
        if randomness:
            y_ref[...] = (mu + noise_ref[...] * sigma).astype(y_ref.dtype)
        else:
            y_ref[...] = (mu + sigma).astype(y_ref.dtype)

    return kernel


def init_decoder_params(key):
    """PyTorch nn.Linear default init (uniform +/- 1/sqrt(fan_in)), deterministic."""
    params = []
    for d_in, d_out in zip(LAYER_DIMS[:-1], LAYER_DIMS[1:]):
        key, kw, kb = jax.random.split(key, 3)
        bound = 1.0 / jnp.sqrt(d_in)
        w = jax.random.uniform(kw, (d_in, d_out), jnp.float32, -bound, bound)
        b = jax.random.uniform(kb, (1, d_out), jnp.float32, -bound, bound)
        params.append((w, b))
    return params, key


def _block_diag(a, b):
    ra, ca = a.shape
    rb, cb = b.shape
    top = jnp.concatenate([a, jnp.zeros((ra, cb), a.dtype)], axis=1)
    bot = jnp.concatenate([jnp.zeros((rb, ca), b.dtype), b], axis=1)
    return jnp.concatenate([top, bot], axis=0)


def pack_double_decoder_params(mu_params, sigma_params, use_bf16=False):
    """Fuse the mu/sigma nets into one lane-packed network.  Call once, outside jit."""
    (mw0, mb0), (mw1, mb1), (mw2, mb2), (mw3, mb3) = mu_params
    (sw0, sb0), (sw1, sb1), (sw2, sb2), (sw3, sb3) = sigma_params
    cd = jnp.bfloat16 if use_bf16 else jnp.float32

    w0 = jnp.concatenate([mw0, sw0], axis=1)                    # (2, 20)  VPU path: keep f32
    b0 = jnp.concatenate([mb0, sb0], axis=1)                    # (1, 20)
    w1 = _block_diag(mw1, sw1).astype(cd)                       # (20, 40)
    b1 = jnp.concatenate([mb1, sb1], axis=1)                    # (1, 40)
    w2 = _block_diag(mw2, sw2).astype(cd)                       # (40, 100)
    b2 = jnp.concatenate([mb2, sb2], axis=1)                    # (1, 100)
    w3m = jnp.concatenate([mw3, jnp.zeros_like(sw3)], axis=0).astype(cd)  # (100, 100)
    w3s = jnp.concatenate([jnp.zeros_like(mw3), sw3], axis=0).astype(cd)  # (100, 100)
    return (w0, b0, w1, b1, w2, b2, w3m, mb3, w3s, sb3)


@functools.partial(jax.jit, static_argnames=("randomness", "return_sigma"))
def double_decoder_forward(x, packed_params, noise_key,
                           randomness=False, return_sigma=False):
    """Runs the fused Pallas kernel, tiled over the batch dimension."""
    batch = x.shape[0]
    tile_b = batch if batch <= DEFAULT_TILE_B else DEFAULT_TILE_B
    grid = (pl.cdiv(batch, tile_b),)

    def row_spec(width):   # batch-tiled, pipelined streams
        return pl.BlockSpec((tile_b, width), lambda i: (i, 0))

    def const_spec(arr):   # grid-invariant whole-array block: stays resident in VMEM
        return pl.BlockSpec(arr.shape, lambda i: (0, 0))

    inputs = [x]
    in_specs = [row_spec(Z_DIM)]
    if randomness:
        noise = (jax.random.normal(noise_key, (batch, OUT_DIM), jnp.float32)
                 * NOISE_SCALER)
        inputs.append(noise)
        in_specs.append(row_spec(OUT_DIM))
    inputs.extend(packed_params)
    in_specs.extend(const_spec(p) for p in packed_params)

    if return_sigma:
        out_shape = (jax.ShapeDtypeStruct((batch, OUT_DIM), jnp.float32),
                     jax.ShapeDtypeStruct((batch, OUT_DIM), jnp.float32))
        out_specs = (row_spec(OUT_DIM), row_spec(OUT_DIM))
    else:
        out_shape = jax.ShapeDtypeStruct((batch, OUT_DIM), jnp.float32)
        out_specs = row_spec(OUT_DIM)

    return pl.pallas_call(
        _make_kernel(randomness, return_sigma),
        grid=grid,
        in_specs=in_specs,
        out_specs=out_specs,
        out_shape=out_shape,
        compiler_params=pltpu.CompilerParams(
            dimension_semantics=("parallel",)),  # megacore / v7x dual-TC sharding
    )(*inputs)


if __name__ == "__main__":
    key = jax.random.PRNGKey(0)
    key, k_x, k_noise = jax.random.split(key, 3)

    batch = 8
    x = jax.random.normal(k_x, (batch, Z_DIM), jnp.float32)

    mu_params, key = init_decoder_params(key)
    sigma_params, key = init_decoder_params(key)
    packed = pack_double_decoder_params(mu_params, sigma_params)

    # Default forward: randomness=False, return_sigma=False  ->  y = mu(x) + sigma(x)
    y = double_decoder_forward(x, packed, k_noise)
    y = jax.block_until_ready(y)

    # Pure-JAX reference.
    def ref_mlp(h, params):
        for w, b in params:
            h = jnp.tanh(h @ w + b)
        return h

    mu_ref = ref_mlp(x, mu_params)
    sg_ref = ref_mlp(x, sigma_params)
    assert y.shape == (batch, OUT_DIM)
    assert jnp.allclose(y, mu_ref + sg_ref, atol=1e-4, rtol=1e-4)

    # randomness=True, return_sigma=True path.
    y_r, sigma_r = double_decoder_forward(x, packed, k_noise,
                                          randomness=True, return_sigma=True)
    jax.block_until_ready((y_r, sigma_r))
    noise = jax.random.normal(k_noise, (batch, OUT_DIM), jnp.float32) * NOISE_SCALER
    assert y_r.shape == (batch, OUT_DIM) and sigma_r.shape == (batch, OUT_DIM)
    assert jnp.allclose(sigma_r, sg_ref, atol=1e-4, rtol=1e-4)
    assert jnp.allclose(y_r, mu_ref + noise * sg_ref, atol=1e-4, rtol=1e-4)

    # bf16 MXU-operand fast path (v6e/v7x), f32 accumulation - looser tolerance.
    packed_bf16 = pack_double_decoder_params(mu_params, sigma_params, use_bf16=True)
    y_bf16 = jax.block_until_ready(double_decoder_forward(x, packed_bf16, k_noise))
    assert jnp.allclose(y_bf16, mu_ref + sg_ref, atol=3e-2, rtol=3e-2)

    print("KERNEL_OK")
</pallas_src>

<mosaic_0001>
module attributes {stable_mosaic.version = 11 : i64} {
  func.func @kernel(%arg0: i32, %arg1: memref<8x2xf32, #tpu.memory_space<vmem>>, %arg2: memref<2x20xf32, #tpu.memory_space<vmem>>, %arg3: memref<1x20xf32, #tpu.memory_space<vmem>>, %arg4: memref<20x40xf32, #tpu.memory_space<vmem>>, %arg5: memref<1x40xf32, #tpu.memory_space<vmem>>, %arg6: memref<40x100xf32, #tpu.memory_space<vmem>>, %arg7: memref<1x100xf32, #tpu.memory_space<vmem>>, %arg8: memref<100x100xf32, #tpu.memory_space<vmem>>, %arg9: memref<1x100xf32, #tpu.memory_space<vmem>>, %arg10: memref<100x100xf32, #tpu.memory_space<vmem>>, %arg11: memref<1x100xf32, #tpu.memory_space<vmem>>, %arg12: memref<8x100xf32, #tpu.memory_space<vmem>>) attributes {dimension_semantics = [#tpu.dimension_semantics<parallel>], iteration_bounds = array<i64: 1>, scalar_prefetch = 0 : i64, scratch_operands = 0 : i64, tpu.core_type = #tpu.core_type<tc>, window_params = [{transform_indices = @transform_0, window_bounds = array<i64: 8, 2>}, {pipeline_mode = #tpu.pipeline_mode<synchronous>, transform_indices = @transform_1, window_bounds = array<i64: 2, 20>}, {pipeline_mode = #tpu.pipeline_mode<synchronous>, transform_indices = @transform_2, window_bounds = array<i64: 1, 20>}, {pipeline_mode = #tpu.pipeline_mode<synchronous>, transform_indices = @transform_3, window_bounds = array<i64: 20, 40>}, {pipeline_mode = #tpu.pipeline_mode<synchronous>, transform_indices = @transform_4, window_bounds = array<i64: 1, 40>}, {pipeline_mode = #tpu.pipeline_mode<synchronous>, transform_indices = @transform_5, window_bounds = array<i64: 40, 100>}, {pipeline_mode = #tpu.pipeline_mode<synchronous>, transform_indices = @transform_6, window_bounds = array<i64: 1, 100>}, {pipeline_mode = #tpu.pipeline_mode<synchronous>, transform_indices = @transform_7, window_bounds = array<i64: 100, 100>}, {pipeline_mode = #tpu.pipeline_mode<synchronous>, transform_indices = @transform_8, window_bounds = array<i64: 1, 100>}, {pipeline_mode = #tpu.pipeline_mode<synchronous>, transform_indices = @transform_9, window_bounds = array<i64: 100, 100>}, {pipeline_mode = #tpu.pipeline_mode<synchronous>, transform_indices = @transform_10, window_bounds = array<i64: 1, 100>}, {transform_indices = @transform_11, window_bounds = array<i64: 8, 100>}]} {
    %c0 = arith.constant 0 : index
    %c0_0 = arith.constant 0 : index
    %0 = vector.load %arg1[%c0, %c0_0] : memref<8x2xf32, #tpu.memory_space<vmem>>, vector<8x2xf32>
    %c0_1 = arith.constant 0 : index
    %c0_2 = arith.constant 0 : index
    %1 = vector.load %arg2[%c0_1, %c0_2] : memref<2x20xf32, #tpu.memory_space<vmem>>, vector<2x20xf32>
    %2 = vector.extract_strided_slice %0 {offsets = [0, 0], sizes = [8, 1], strides = [1, 1]} : vector<8x2xf32> to vector<8x1xf32>
    %3 = vector.extract_strided_slice %1 {offsets = [0, 0], sizes = [1, 20], strides = [1, 1]} : vector<2x20xf32> to vector<1x20xf32>
    %4 = vector.broadcast %2 : vector<8x1xf32> to vector<8x20xf32>
    %5 = vector.broadcast %3 : vector<1x20xf32> to vector<8x20xf32>
    %6 = arith.mulf %4, %5 : vector<8x20xf32>
    %7 = vector.extract_strided_slice %0 {offsets = [0, 1], sizes = [8, 1], strides = [1, 1]} : vector<8x2xf32> to vector<8x1xf32>
    %8 = vector.extract_strided_slice %1 {offsets = [1, 0], sizes = [1, 20], strides = [1, 1]} : vector<2x20xf32> to vector<1x20xf32>
    %9 = vector.broadcast %7 : vector<8x1xf32> to vector<8x20xf32>
    %10 = vector.broadcast %8 : vector<1x20xf32> to vector<8x20xf32>
    %11 = arith.mulf %9, %10 : vector<8x20xf32>
    %12 = arith.addf %6, %11 : vector<8x20xf32>
    %c0_3 = arith.constant 0 : index
    %c0_4 = arith.constant 0 : index
    %13 = vector.load %arg3[%c0_3, %c0_4] : memref<1x20xf32, #tpu.memory_space<vmem>>, vector<1x20xf32>
    %14 = vector.broadcast %13 : vector<1x20xf32> to vector<8x20xf32>
    %15 = arith.addf %12, %14 : vector<8x20xf32>
    %16 = math.tanh %15 : vector<8x20xf32>
    %c0_5 = arith.constant 0 : index
    %c0_6 = arith.constant 0 : index
    %17 = vector.load %arg4[%c0_5, %c0_6] : memref<20x40xf32, #tpu.memory_space<vmem>>, vector<20x40xf32>
    %cst = arith.constant dense<0.000000e+00> : vector<8x40xf32>
    %18 = tpu.matmul %16, %17, %cst {dimension_numbers = #tpu.dot_dimension_numbers<[1], [0], [0], [1], [0, 0, 1, 1], [], []>} : vector<8x20xf32>, vector<20x40xf32>, vector<8x40xf32> -> vector<8x40xf32>
    %c0_7 = arith.constant 0 : index
    %c0_8 = arith.constant 0 : index
    %19 = vector.load %arg5[%c0_7, %c0_8] : memref<1x40xf32, #tpu.memory_space<vmem>>, vector<1x40xf32>
    %20 = vector.broadcast %19 : vector<1x40xf32> to vector<8x40xf32>
    %21 = arith.addf %18, %20 : vector<8x40xf32>
    %22 = math.tanh %21 : vector<8x40xf32>
    %c0_9 = arith.constant 0 : index
    %c0_10 = arith.constant 0 : index
    %23 = vector.load %arg6[%c0_9, %c0_10] : memref<40x100xf32, #tpu.memory_space<vmem>>, vector<40x100xf32>
    %cst_11 = arith.constant dense<0.000000e+00> : vector<8x100xf32>
    %24 = tpu.matmul %22, %23, %cst_11 {dimension_numbers = #tpu.dot_dimension_numbers<[1], [0], [0], [1], [0, 0, 1, 1], [], []>} : vector<8x40xf32>, vector<40x100xf32>, vector<8x100xf32> -> vector<8x100xf32>
    %c0_12 = arith.constant 0 : index
    %c0_13 = arith.constant 0 : index
    %25 = vector.load %arg7[%c0_12, %c0_13] : memref<1x100xf32, #tpu.memory_space<vmem>>, vector<1x100xf32>
    %26 = vector.broadcast %25 : vector<1x100xf32> to vector<8x100xf32>
    %27 = arith.addf %24, %26 : vector<8x100xf32>
    %28 = math.tanh %27 : vector<8x100xf32>
    %c0_14 = arith.constant 0 : index
    %c0_15 = arith.constant 0 : index
    %29 = vector.load %arg8[%c0_14, %c0_15] : memref<100x100xf32, #tpu.memory_space<vmem>>, vector<100x100xf32>
    %cst_16 = arith.constant dense<0.000000e+00> : vector<8x100xf32>
    %30 = tpu.matmul %28, %29, %cst_16 {dimension_numbers = #tpu.dot_dimension_numbers<[1], [0], [0], [1], [0, 0, 1, 1], [], []>} : vector<8x100xf32>, vector<100x100xf32>, vector<8x100xf32> -> vector<8x100xf32>
    %c0_17 = arith.constant 0 : index
    %c0_18 = arith.constant 0 : index
    %31 = vector.load %arg9[%c0_17, %c0_18] : memref<1x100xf32, #tpu.memory_space<vmem>>, vector<1x100xf32>
    %32 = vector.broadcast %31 : vector<1x100xf32> to vector<8x100xf32>
    %33 = arith.addf %30, %32 : vector<8x100xf32>
    %34 = math.tanh %33 : vector<8x100xf32>
    %c0_19 = arith.constant 0 : index
    %c0_20 = arith.constant 0 : index
    %35 = vector.load %arg10[%c0_19, %c0_20] : memref<100x100xf32, #tpu.memory_space<vmem>>, vector<100x100xf32>
    %cst_21 = arith.constant dense<0.000000e+00> : vector<8x100xf32>
    %36 = tpu.matmul %28, %35, %cst_21 {dimension_numbers = #tpu.dot_dimension_numbers<[1], [0], [0], [1], [0, 0, 1, 1], [], []>} : vector<8x100xf32>, vector<100x100xf32>, vector<8x100xf32> -> vector<8x100xf32>
    %c0_22 = arith.constant 0 : index
    %c0_23 = arith.constant 0 : index
    %37 = vector.load %arg11[%c0_22, %c0_23] : memref<1x100xf32, #tpu.memory_space<vmem>>, vector<1x100xf32>
    %38 = vector.broadcast %37 : vector<1x100xf32> to vector<8x100xf32>
    %39 = arith.addf %36, %38 : vector<8x100xf32>
    %40 = math.tanh %39 : vector<8x100xf32>
    %41 = arith.addf %34, %40 : vector<8x100xf32>
    %c0_24 = arith.constant 0 : index
    %c0_25 = arith.constant 0 : index
    %42 = vector.load %arg12[%c0_24, %c0_25] : memref<8x100xf32, #tpu.memory_space<vmem>>, vector<8x100xf32>
    tpu.vector_store %arg12[%c0_24, %c0_25], %41 {strides = array<i32>} : memref<8x100xf32, #tpu.memory_space<vmem>>, vector<8x100xf32>,
    return
  }
  func.func @transform_0(%arg0: i32) -> (i32, i32) {
    %c0_i32 = arith.constant 0 : i32
    %c0_i32_0 = arith.constant 0 : i32
    return %arg0, %c0_i32 : i32, i32
  }
  func.func @transform_1(%arg0: i32) -> (i32, i32) {
    %c0_i32 = arith.constant 0 : i32
    %c0_i32_0 = arith.constant 0 : i32
    %c0_i32_1 = arith.constant 0 : i32
    return %c0_i32, %c0_i32_0 : i32, i32
  }
  func.func @transform_2(%arg0: i32) -> (i32, i32) {
    %c0_i32 = arith.constant 0 : i32
    %c0_i32_0 = arith.constant 0 : i32
    %c0_i32_1 = arith.constant 0 : i32
    return %c0_i32, %c0_i32_0 : i32, i32
  }
  func.func @transform_3(%arg0: i32) -> (i32, i32) {
    %c0_i32 = arith.constant 0 : i32
    %c0_i32_0 = arith.constant 0 : i32
    %c0_i32_1 = arith.constant 0 : i32
    return %c0_i32, %c0_i32_0 : i32, i32
  }
  func.func @transform_4(%arg0: i32) -> (i32, i32) {
    %c0_i32 = arith.constant 0 : i32
    %c0_i32_0 = arith.constant 0 : i32
    %c0_i32_1 = arith.constant 0 : i32
    return %c0_i32, %c0_i32_0 : i32, i32
  }
  func.func @transform_5(%arg0: i32) -> (i32, i32) {
    %c0_i32 = arith.constant 0 : i32
    %c0_i32_0 = arith.constant 0 : i32
    %c0_i32_1 = arith.constant 0 : i32
    return %c0_i32, %c0_i32_0 : i32, i32
  }
  func.func @transform_6(%arg0: i32) -> (i32, i32) {
    %c0_i32 = arith.constant 0 : i32
    %c0_i32_0 = arith.constant 0 : i32
    %c0_i32_1 = arith.constant 0 : i32
    return %c0_i32, %c0_i32_0 : i32, i32
  }
  func.func @transform_7(%arg0: i32) -> (i32, i32) {
    %c0_i32 = arith.constant 0 : i32
    %c0_i32_0 = arith.constant 0 : i32
    %c0_i32_1 = arith.constant 0 : i32
    return %c0_i32, %c0_i32_0 : i32, i32
  }
  func.func @transform_8(%arg0: i32) -> (i32, i32) {
    %c0_i32 = arith.constant 0 : i32
    %c0_i32_0 = arith.constant 0 : i32
    %c0_i32_1 = arith.constant 0 : i32
    return %c0_i32, %c0_i32_0 : i32, i32
  }
  func.func @transform_9(%arg0: i32) -> (i32, i32) {
    %c0_i32 = arith.constant 0 : i32
    %c0_i32_0 = arith.constant 0 : i32
    %c0_i32_1 = arith.constant 0 : i32
    return %c0_i32, %c0_i32_0 : i32, i32
  }
  func.func @transform_10(%arg0: i32) -> (i32, i32) {
    %c0_i32 = arith.constant 0 : i32
    %c0_i32_0 = arith.constant 0 : i32
    %c0_i32_1 = arith.constant 0 : i32
    return %c0_i32, %c0_i32_0 : i32, i32
  }
  func.func @transform_11(%arg0: i32) -> (i32, i32) {
    %c0_i32 = arith.constant 0 : i32
    %c0_i32_0 = arith.constant 0 : i32
    return %arg0, %c0_i32 : i32, i32
  }
}

</mosaic_0001>

<bundles_post_ra>
// kernel: double_decoder_forward.1
= control target key start
LH: loop header
LB: loop body
LE: loop exit
PB: predicated region body
PF: predicated region fallthrough
CT: control target
= control target key end

     0   :  { %16 = vsyncpa [#allocation3], 0  ;;  %s1041_s0 = inlined_call_operand.vmem [shape: f32[8,2], index: 0, kind: input, shape index: {}]   ;;  %s1042_s1 = inlined_call_operand.vmem [shape: f32[2,20], index: 1, kind: input, shape index: {}]   ;;  %s1043_s2 = inlined_call_operand.vmem [shape: f32[1,20], index: 2, kind: input, shape index: {}]   ;;  %s1044_s3 = inlined_call_operand.hbm [shape: f32[20,40], index: 3, kind: input, shape index: {}]   ;;  %s1045_s4 = inlined_call_operand.vmem [shape: f32[1,40], index: 4, kind: input, shape index: {}]   ;;  %s1046_s5 = inlined_call_operand.hbm [shape: f32[40,100], index: 5, kind: input, shape index: {}]   ;;  %s1047_s6 = inlined_call_operand.vmem [shape: f32[1,100], index: 6, kind: input, shape index: {}]   ;;  %s1048_s7 = inlined_call_operand.hbm [shape: f32[100,100], index: 7, kind: input, shape index: {}]   ;;  %s1049_s8 = inlined_call_operand.vmem [shape: f32[1,100], index: 8, kind: input, shape index: {}]   ;;  %s1050_s9 = inlined_call_operand.hbm [shape: f32[100,100], index: 9, kind: input, shape index: {}]   ;;  %s1051_s10 = inlined_call_operand.vmem [shape: f32[1,100], index: 10, kind: input, shape index: {}]   ;;  %s1052_s11 = inlined_call_operand.hbm [shape: f32[8,100], index: 11, kind: output, shape index: {}]  }
   0x1   :  { %17 = vsyncpa [#allocation6], 0 }
   0x2   :  { %18 = vsyncpa [#allocation9], 0 }
   0x3   :  { %19 = vsyncpa [#allocation4], 0  ;;  %s829_s17 = smov [#allocation5]   ;;  %s830_s19 = smov [#allocation2]  }
   0x4   :  { %s45_s18 = sshll.u32 %s829_s17, 4  ;;  %s31_s20 = sshll.u32 %s830_s19, 4  ;;  %s46_s18 = int_to_ptr.vmem [resolvable:$true] %s45_s18  ;;  %s901_s20 = int_to_ptr.vmem [resolvable:$true] %s31_s20 }
   0x5   :  { %s711_s23 = scalar_lea.hbm %s1046_s5, 640 }
   0x6   :  { %p712_p0 = scmp.ne.s32.totalorder %s1046_s5, %s711_s23  ;;  %p715_p1 = scmp.lt.u32.totalorder %s711_s23, %s1046_s5 }
   0x8   :  { %p717_p2 = pnand %p715_p1, %p712_p0 }
   0xa   :  { %720 = shalt.err (!%p717_p2)
}
   0xb   :  { %s721_s28 = scalar_lea.vmem %s46_s18, 640  ;;  %p726_p4 = scmp.lt.s32.totalorder %s46_s18, %s46_s18 }
   0xc   :  { %p722_p3 = scmp.ne.s32.totalorder %s46_s18, %s721_s28  ;;  %p727_p5 = scmp.lt.s32.totalorder %s721_s28, %s721_s28 }
   0xe   :  { %p728_p6 = por %p727_p5, %p726_p4 }
  0x10   :  { %p729_p7 = pnand %p728_p6, %p722_p3 }
  0x12   :  { %732 = shalt.err (!%p729_p7)
}
  0x13   :  { %s831_s29 = smov 128   ;;  %s832_s30 = smov 8  }
  0x14   :  { %51 = dma.hbm_to_vmem [thread:$0]  %s1046_s5, 640, %s46_s18, [#allocation6], %s831_s29, %s831_s29, %s832_s30  }
  0x15   :  { %s733_s16 = scalar_lea.hbm %s1044_s3, 384 }
  0x16   :  { %p734_p8 = scmp.ne.s32.totalorder %s1044_s3, %s733_s16  ;;  %p737_p9 = scmp.lt.u32.totalorder %s733_s16, %s1044_s3 }
  0x18   :  { %p739_p10 = pnand %p737_p9, %p734_p8 }
  0x1a   :  { %742 = shalt.err (!%p739_p10)
}
  0x1b   :  { %s743_s23 = scalar_lea.vmem %s901_s20, 384  ;;  %p748_p12 = scmp.lt.s32.totalorder %s901_s20, %s901_s20 }
  0x1c   :  { %p744_p11 = scmp.ne.s32.totalorder %s901_s20, %s743_s23  ;;  %p749_p13 = scmp.lt.s32.totalorder %s743_s23, %s743_s23 }
  0x1e   :  { %p750_p0 = por %p749_p13, %p748_p12 }
  0x20   :  { %p751_p1 = pnand %p750_p0, %p744_p11 }
  0x22   :  { %754 = shalt.err (!%p751_p1)
}
  0x23   :  { %37 = dma.hbm_to_vmem [thread:$0]  %s1044_s3, 384, %s901_s20, [#allocation3], %s831_s29, %s831_s29, %s832_s30  }
  0x24   :  { %s833_s24 = smov [#allocation7]   ;;  %s834_s26 = smov [#allocation8]  }
  0x25   :  { %s59_s25 = sshll.u32 %s833_s24, 4  ;;  %s73_s27 = sshll.u32 %s834_s26, 4  ;;  %s60_s25 = int_to_ptr.vmem [resolvable:$true] %s59_s25  ;;  %s938_s27 = int_to_ptr.vmem [resolvable:$true] %s73_s27 }
  0x26   :  { %s755_s13 = scalar_lea.hbm %s1048_s7, 1664 }
  0x27   :  { %p756_p2 = scmp.ne.s32.totalorder %s1048_s7, %s755_s13  ;;  %p759_p3 = scmp.lt.u32.totalorder %s755_s13, %s1048_s7 }
  0x29   :  { %p761_p4 = pnand %p759_p3, %p756_p2 }
  0x2b   :  { %764 = shalt.err (!%p761_p4)
}
  0x2c   :  { %s765_s3 = scalar_lea.vmem %s60_s25, 1664  ;;  %p770_p6 = scmp.lt.s32.totalorder %s60_s25, %s60_s25 }
  0x2d   :  { %p766_p5 = scmp.ne.s32.totalorder %s60_s25, %s765_s3  ;;  %p771_p7 = scmp.lt.s32.totalorder %s765_s3, %s765_s3 }
  0x2f   :  { %p772_p8 = por %p771_p7, %p770_p6 }
  0x31   :  { %p773_p9 = pnand %p772_p8, %p766_p5 }
  0x33   :  { %776 = shalt.err (!%p773_p9)
}
  0x34   :  { %65 = dma.hbm_to_vmem [thread:$0]  %s1048_s7, 1664, %s60_s25, [#allocation6], %s831_s29, %s831_s29, %s832_s30  }
  0x35   :  { %s777_s23 = scalar_lea.hbm %s1050_s9, 1664 }
  0x36   :  { %p778_p10 = scmp.ne.s32.totalorder %s1050_s9, %s777_s23  ;;  %p781_p11 = scmp.lt.u32.totalorder %s777_s23, %s1050_s9 }
  0x38   :  { %p783_p12 = pnand %p781_p11, %p778_p10 }
  0x3a   :  { %786 = shalt.err (!%p783_p12)
}
  0x3b   :  { %s787_s28 = scalar_lea.vmem %s938_s27, 1664  ;;  %p792_p0 = scmp.lt.s32.totalorder %s938_s27, %s938_s27 }
  0x3c   :  { %p788_p13 = scmp.ne.s32.totalorder %s938_s27, %s787_s28  ;;  %p793_p1 = scmp.lt.s32.totalorder %s787_s28, %s787_s28 }
  0x3e   :  { %p794_p2 = por %p793_p1, %p792_p0 }
  0x40   :  { %p795_p3 = pnand %p794_p2, %p788_p13 }
  0x42   :  { %798 = shalt.err (!%p795_p3)
}
  0x43   :  { %79 = dma.hbm_to_vmem [thread:$0]  %s1050_s9, 1664, %s938_s27, [#allocation9], %s831_s29, %s831_s29, %s832_s30  }
  0x44   :  { %821 = dma.done.wait [#allocation3], 384  }
  0x45   :  { %822 = vsyncadd [#allocation3], 4294966912 }
  0x46   :  { %823 = dma.done.wait [#allocation6], 2304  }
  0x47   :  { %824 = vsyncadd [#allocation6], 4294964992 }
  0x48   :  { %825 = dma.done.wait [#allocation9], 1664  }
  0x49   :  { %826 = vsyncadd [#allocation9], 4294965632  ;;  %v835_v0 = vmov 0   ;;  %v94_v1 = vld [vmem:[%s1041_s0] sm:$0xff]  ;;  %v836_v2 = vmov 1   ;;  %v125_v3 = vld [vmem:[#allocation2] sm:$0xff]  ;;  %v101_v9 = vlaneseq }
  0x4a   :  { %699 = vset.pattern.permute.xlu0 %v835_v0  ;;  %v126_v4 = vld [vmem:[#allocation2 + $0x8] sm:$0xff]  ;;  %v837_v5 = vmov 0.0|0.0   ;;  %vm838_vm0 = vmmov 0   ;;  %v839_v7 = vmov 0.0   ;;  %v127_v8 = vld [vmem:[#allocation2 + $0x10] sm:$0xf] }
  0x4b   :  { %98 = vperm.xlu0 %699, %v94_v1   ;;  %642 = vmatprep.subr.bf16.mxu0 %v837_v5  ;;  %v643_v6 = vpack.c.bf16 %v126_v4, %v125_v3  ;;  %vm139_vm1 = vcmask 1043456   ;;  %v102_v10 = vshrl.u32 %v101_v9, 7  ;;  %v95_v13 = vld [vmem:[%s1042_s1] sm:$0x3]  ;;  %vm135_vm2 = vcmask 162816   ;;  %v214_v24 = vld [vmem:[#allocation5] sm:$0xff] }
  0x4c   :  { %645 = vmatprep.subr.bf16.mxu1 %v837_v5  ;;  %568 = vmatprep.mubr.msk.f32.mxu0 %vm838_vm0, %v839_v7  ;;  %v512_v20 = vld [vmem:[%s1043_s2] ss:$0 sm:$0xff]  ;;  %v215_v25 = vld [vmem:[#allocation5 + $0x8] sm:$0xff]  ;;  %v216_v27 = vld [vmem:[#allocation5 + $0x10] sm:$0xff]  ;;  %vm226_vm3 = vcmask 326656   ;;  %vm321_vm4 = vcmask 818176  }
  0x4d   :  { %581 = vmatprep.mubr.msk.f32.mxu1 %vm838_vm0, %v839_v7  ;;  %644 = vmatpush3.bf16.msra.mxu0 %v643_v6  ;;  %v103_v11 = vsub.s32 0, %v102_v10  ;;  %v112_v12 = vsub.s32 1, %v102_v10  ;;  %v646_v26 = vpack.c.bf16 %v215_v25, %v214_v24  ;;  %v217_v28 = vld [vmem:[#allocation5 + $0x18] sm:$0xff]  ;;  %v218_v30 = vld [vmem:[#allocation5 + $0x20] sm:$0xff]  ;;  %v301_v31 = vld [vmem:[#allocation7] sm:$0xff] }
  0x4e   :  { %566 = vmatprep.subr.mxu0 %v839_v7  ;;  %v649_v29 = vpack.c.bf16 %v217_v28, %v216_v27  ;;  %v302_v32 = vld [vmem:[#allocation7 + $0x8] sm:$0xff]  ;;  %v303_v34 = vld [vmem:[#allocation7 + $0x10] sm:$0xff]  ;;  %v304_v35 = vld [vmem:[#allocation7 + $0x18] sm:$0xff] }
  0x4f   :  { %700 = vset.pattern.permute.xlu0 %v836_v2  ;;  %v104_v15 = vrot.slane %v95_v13, %v103_v11  ;;  %v113_v16 = vrot.slane %v95_v13, %v112_v12  ;;  %647 = vmatpush3.bf16.msra.mxu1 %v646_v26  ;;  %v652_v33 = vpack.c.bf16 %v302_v32, %v301_v31  ;;  %v305_v37 = vld [vmem:[#allocation7 + $0x20] sm:$0xff]  ;;  %v306_v38 = vld [vmem:[#allocation7 + $0x28] sm:$0xff]  ;;  %v513_v40 = vld [vmem:[%s1045_s4] ss:$0 sm:$0xff] }
  0x50   :  { %107 = vperm.xlu0 %700, %v94_v1   ;;  %648 = vmatprep.subr.bf16.mxu1 %v837_v5  ;;  %v655_v36 = vpack.c.bf16 %v304_v35, %v303_v34  ;;  %v658_v39 = vpack.c.bf16 %v306_v38, %v305_v37  ;;  %v399_v44 = vld [vmem:[#allocation8] sm:$0xff]  ;;  %v400_v45 = vld [vmem:[#allocation8 + $0x8] sm:$0xff]  ;;  %v401_v47 = vld [vmem:[#allocation8 + $0x10] sm:$0xff] }
  0x51   :  { %567 = vmatpush3.msk.msra.mxu0 %vm139_vm1, %v127_v8  ;;  %v670_v46 = vpack.c.bf16 %v400_v45, %v399_v44  ;;  %v402_v48 = vld [vmem:[#allocation8 + $0x18] sm:$0xff]  ;;  %v403_v51 = vld [vmem:[#allocation8 + $0x20] sm:$0xff]  ;;  %v404_v52 = vld [vmem:[#allocation8 + $0x28] sm:$0xff] }
  0x52   :  { %651 = vmatprep.subr.bf16.mxu0 %v837_v5  ;;  %v673_v50 = vpack.c.bf16 %v402_v48, %v401_v47  ;;  %v676_v53 = vpack.c.bf16 %v404_v52, %v403_v51  ;;  %v307_v54 = vld [vmem:[#allocation7 + $0x30] sm:$0xff]  ;;  %v308_v55 = vld [vmem:[#allocation7 + $0x38] sm:$0xff]  ;;  %v406_v58 = vld [vmem:[#allocation8 + $0x38] sm:$0xff] }
  0x53   :  { %650 = vmatpush3.bf16.msra.mxu1 %v649_v29  ;;  %v405_v56 = vld [vmem:[#allocation8 + $0x30] sm:$0xff]  ;;  %v661_v57 = vpack.c.bf16 %v308_v55, %v307_v54  ;;  %v309_v60 = vld [vmem:[#allocation7 + $0x40] sm:$0xff]  ;;  %v310_v61 = vld [vmem:[#allocation7 + $0x48] sm:$0xff] }
  0x54   :  { %579 = vmatprep.subr.mxu1 %v839_v7  ;;  %v679_v59 = vpack.c.bf16 %v406_v58, %v405_v56  ;;  %v407_v62 = vld [vmem:[#allocation8 + $0x40] sm:$0xff]  ;;  %v664_v63 = vpack.c.bf16 %v310_v61, %v309_v60  ;;  %v408_v0 = vld [vmem:[#allocation8 + $0x48] sm:$0xff]  ;;  %v312_v2 = vld [vmem:[#allocation7 + $0x58] sm:$0xff] }
  0x55   :  { %v311_v1 = vld [vmem:[#allocation7 + $0x50] sm:$0xff]  ;;  %v682_v3 = vpack.c.bf16 %v408_v0, %v407_v62  ;;  %v409_v4 = vld [vmem:[#allocation8 + $0x50] sm:$0xff]  ;;  %v410_v6 = vld [vmem:[#allocation8 + $0x58] sm:$0xff] }
  0x56   :  { %v667_v8 = vpack.c.bf16 %v312_v2, %v311_v1  ;;  %v685_v9 = vpack.c.bf16 %v410_v6, %v409_v4  ;;  %v313_v10 = vld [vmem:[#allocation7 + $0x60] sm:$0xf]  ;;  %v411_v11 = vld [vmem:[#allocation8 + $0x60] sm:$0xf]  ;;  %v516_v12 = vld [vmem:[%s1047_s6] ss:$0 sm:$0xff] }
  0x57   :  { %580 = vmatpush3.msra.mxu1 %v218_v30  ;;  %s840_s6 = smov [#allocation10]  }
  0x58   :  { %669 = vmatprep.subr.bf16.mxu1 %v837_v5  ;;  %s501_s3 = sshll.u32 %s840_s6, 4  ;;  %s502_s3 = int_to_ptr.vmem [resolvable:$true] %s501_s3 }
  0x59   :  { %p804_p5 = scmp.lt.s32.totalorder %s502_s3, %s502_s3 }
  0xca   :  { %v99_v14 = vpop.permute.xlu0 %98 }
  0xcb   :  { %v105_v18 = vmul.f32 %v104_v15, %v99_v14 }
  0xcf   :  { %v108_v17 = vpop.permute.xlu0 %107 }
  0xd0   :  { %v114_v19 = vmul.f32 %v113_v16, %v108_v17  ;;  %v521_v16 = vld [vmem:[%s1051_s10] ss:$0 sm:$0xff] }
  0xd2   :  { %v115_v21 = vadd.f32 %v114_v19, %v105_v18 }
  0xd4   :  { %v123_v22 = vadd.f32 %v512_v20, %v115_v21 }
  0xd6   :  { %701 = vtanh.f32 %v123_v22 }
  0xe0   :  { %v702_v23 = vpop.eup %701 }
  0xe1   :  { %569 = vmatmul.mubr.msk.f32.vlgmr.msra.gmra.mrb[0].mxu0 %vm135_vm2, %v702_v23 }
  0xe2   :  { %610 = vmatprep.mubr.msk.f32.mxu0 %vm838_vm0, %v839_v7  ;;  %653 = vmatpush3.bf16.msra.mxu0 %v652_v33 }
  0xe3   :  { %654 = vmatprep.subr.bf16.mxu0 %v837_v5 }
  0xe6   :  { %656 = vmatpush3.bf16.msra.mxu0 %v655_v36 }
  0xe7   :  { %657 = vmatprep.subr.bf16.mxu0 %v837_v5 }
  0xea   :  { %659 = vmatpush3.bf16.msra.mxu0 %v658_v39 }
  0xeb   :  { %660 = vmatprep.subr.bf16.mxu0 %v837_v5 }
  0xee   :  { %662 = vmatpush3.bf16.msra.mxu0 %v661_v57 }
  0xef   :  { %663 = vmatprep.subr.bf16.mxu0 %v837_v5 }
  0xf2   :  { %665 = vmatpush3.bf16.msra.mxu0 %v664_v63 }
  0xf3   :  { %666 = vmatprep.subr.bf16.mxu0 %v837_v5 }
  0xf6   :  { %668 = vmatpush3.bf16.msra.mxu0 %v667_v8 }
  0xf7   :  { %608 = vmatprep.subr.mxu0 %v839_v7 }
  0xfa   :  { %609 = vmatpush3.msk.msra.mxu0 %vm139_vm1, %v313_v10 }
 0x1b4   :  { %v209_v41 = vpop.f32.mrb[0].mxu0 }
 0x1b5   :  { %v210_v42 = vadd.f32 %v513_v40, %v209_v41  ;;  %v570_v43 = vpop.f32.mrb[1].mxu0 }
 0x1b7   :  { %703 = vtanh.f32 %v210_v42 }
 0x1c1   :  { %v704_v49 = vpop.eup %703 }
 0x1c2   :  { %582 = vmatmul.mubr.msk.f32.vlgmr.msra.gmra.mrb[0].mxu1 %vm226_vm3, %v704_v49 }
 0x1c3   :  { %671 = vmatpush3.bf16.msra.mxu1 %v670_v46  ;;  %639 = vmatprep.mubr.msk.f32.mxu1 %vm838_vm0, %v839_v7 }
 0x1c4   :  { %672 = vmatprep.subr.bf16.mxu1 %v837_v5 }
 0x1c7   :  { %674 = vmatpush3.bf16.msra.mxu1 %v673_v50 }
 0x1c8   :  { %675 = vmatprep.subr.bf16.mxu1 %v837_v5 }
 0x1cb   :  { %677 = vmatpush3.bf16.msra.mxu1 %v676_v53 }
 0x1cc   :  { %678 = vmatprep.subr.bf16.mxu1 %v837_v5 }
 0x1cf   :  { %680 = vmatpush3.bf16.msra.mxu1 %v679_v59 }
 0x1d0   :  { %681 = vmatprep.subr.bf16.mxu1 %v837_v5 }
 0x1d3   :  { %683 = vmatpush3.bf16.msra.mxu1 %v682_v3 }
 0x1d4   :  { %684 = vmatprep.subr.bf16.mxu1 %v837_v5 }
 0x1d7   :  { %686 = vmatpush3.bf16.msra.mxu1 %v685_v9 }
 0x1d8   :  { %637 = vmatprep.subr.mxu1 %v839_v7  ;;  %v518_v7 = vld [vmem:[%s1049_s8] ss:$0 sm:$0xff]  ;;  %s799_s8 = scalar_lea.vmem %s502_s3, 128 }
 0x1d9   :  { %p800_p4 = scmp.ne.s32.totalorder %s502_s3, %s799_s8  ;;  %p805_p6 = scmp.lt.s32.totalorder %s799_s8, %s799_s8 }
 0x1db   :  { %638 = vmatpush3.msk.msra.mxu1 %vm139_vm1, %v411_v11  ;;  %p806_p7 = por %p805_p6, %p804_p5 }
 0x1dd   :  { %p807_p8 = pnand %p806_p7, %p800_p4 }
 0x295   :  { %v296_v13 = vpop.f32.mrb[0].mxu1 }
 0x296   :  { %v297_v14 = vadd.f32 %v516_v12, %v296_v13  ;;  %v583_v15 = vpop.f32.mrb[1].mxu1 }
 0x298   :  { %705 = vtanh.f32 %v297_v14 }
 0x2a2   :  { %v706_v5 = vpop.eup %705 }
 0x2a3   :  { %611 = vmatmul.mubr.msk.f32.vlgmr.msra.gmra.mrb[2].mxu0 %vm321_vm4, %v706_v5  ;;  %640 = vmatmul.mubr.msk.f32.vlgmr.msra.gmra.mrb[2].mxu1 %vm321_vm4, %v706_v5 }
 0x376   :  { %v394_v17 = vpop.f32.mrb[2].mxu0  ;;  %v488_v18 = vpop.f32.mrb[2].mxu1 }
 0x377   :  { %v395_v19 = vadd.f32 %v518_v7, %v394_v17  ;;  %v489_v20 = vadd.f32 %v521_v16, %v488_v18  ;;  %v612_v21 = vpop.f32.mrb[3].mxu0  ;;  %v641_v22 = vpop.f32.mrb[3].mxu1 }
 0x379   :  { %707 = vtanh.f32 %v395_v19 }
 0x37a   :  { %709 = vtanh.f32 %v489_v20 }
 0x383   :  { %v708_v23 = vpop.eup %707 }
 0x384   :  { %v710_v24 = vpop.eup %709 }
 0x385   :  { %v493_v25 = vadd.f32 %v710_v24, %v708_v23 }
 0x387   :  { %494 = vst.msk [vmem:[#allocation10] sm:$0xff] %vm321_vm4, %v493_v25 }
 0x388   :  { %810 = shalt.err (!%p807_p8)
}
 0x389   :  { %s811_s19 = scalar_lea.hbm %s1052_s11, 128 }
 0x38a   :  { %p812_p9 = scmp.ne.s32.totalorder %s1052_s11, %s811_s19  ;;  %p815_p10 = scmp.lt.u32.totalorder %s811_s19, %s1052_s11 }
 0x38c   :  { %p817_p11 = pnand %p815_p10, %p812_p9 }
 0x38e   :  { %820 = shalt.err (!%p817_p11)
}
 0x38f   :  { %504 = dma.vmem_to_hbm [thread:$0]  %s502_s3, 128, %s1052_s11, [#allocation4]  }
 0x390   :  { %827 = dma.done.wait [#allocation4], 128  }
 0x391   :  { %828 = vsyncadd [#allocation4], 4294967168 }
 0x392   :  { %508 = vsyncpa [#allocation3], 1 }
 0x393   :  { %509 = vsyncpa [#allocation6], 1 }
 0x394   :  { %510 = vsyncpa [#allocation9], 1 }
 0x395   :  { %511 = vsyncpa [#allocation4], 1 }

</bundles_post_ra>
